<compile_context>
chip_gen: v7x
topology: tpu7x:2x2x1
jax: 0.10.0
libtpu: 0.0.40
codegen_flags: <defaults>
</compile_context>

<pallas_src>
import functools

import jax
import jax.numpy as jnp
from jax import lax
from jax.experimental import pallas as pl
from jax.experimental.pallas import tpu as pltpu

EPS_BN = 1e-5  # PyTorch nn.BatchNorm2d default


# ----------------------------- Pallas kernel --------------------------------

def _bn_train_kernel(x_ref, g_ref, b_ref, o_ref, *, inv_n, eps):
    """Training-mode BN over one channel block.

    x_ref: (B, c_blk, HW) f32   -- HW on lanes (lane-dense)
    g_ref, b_ref: (1, c_blk, 1) f32
    o_ref: (B, c_blk, HW) f32
    """
    x = x_ref[...]

    # Single pass: sum and sum-of-squares together (lane reduce, then batch reduce).
    s = jnp.sum(x, axis=2, keepdims=True)          # (B, c_blk, 1)
    ss = jnp.sum(x * x, axis=2, keepdims=True)     # (B, c_blk, 1)
    s = jnp.sum(s, axis=0, keepdims=True)          # (1, c_blk, 1)
    ss = jnp.sum(ss, axis=0, keepdims=True)        # (1, c_blk, 1)

    mean = s * inv_n
    var = ss * inv_n - mean * mean                 # biased variance (training mode)
    inv_std = lax.rsqrt(var + eps)                 # EUP

    # Fold normalization + affine into a single scale/shift FMA per element.
    scale = g_ref[...] * inv_std                   # (1, c_blk, 1)
    shift = b_ref[...] - mean * scale              # (1, c_blk, 1)
    o_ref[...] = x * scale + shift


# ------------------------------- wrapper -------------------------------------

def _pick_c_block(B, C, HW, budget_bytes=8 << 20):
    """Largest channel-block size that (a) satisfies the (8,*) sublane rule,
    (b) keeps double-buffered in+out blocks under the VMEM budget, and
    (c) prefers a grid of >= 2 steps so v7x can use both TensorCores."""
    if C % 8 != 0:
        return C  # full-extent block is always legal
    candidates = [cb for cb in range(8, C + 1, 8) if C % cb == 0]
    # 2 buffers x (input + output) x block bytes
    fits = [cb for cb in candidates if 4 * B * cb * HW * 4 <= budget_bytes]
    if not fits:
        return 8
    multi = [cb for cb in fits if C // cb >= 2]
    return max(multi) if multi else max(fits)


def batchnorm2d_wrap_forward(x, gamma, beta, y=None, eps=EPS_BN):
    """Forward of BatchNorm2dWrap: BatchNorm2d(x) in training mode.

    x: (B, C, H, W) NCHW (as in PyTorch).  gamma/beta: (C,).  `y` is ignored,
    matching the reference wrapper's signature.
    """
    del y
    B, C, H, W = x.shape
    HW = H * W

    x3 = x.astype(jnp.float32).reshape(B, C, HW)       # free reshape; HW -> lanes
    g3 = gamma.astype(jnp.float32).reshape(1, C, 1)
    b3 = beta.astype(jnp.float32).reshape(1, C, 1)

    c_blk = _pick_c_block(B, C, HW)
    grid = (C // c_blk,)
    kernel = functools.partial(_bn_train_kernel,
                               inv_n=1.0 / float(B * HW), eps=float(eps))

    out = pl.pallas_call(
        kernel,
        out_shape=jax.ShapeDtypeStruct((B, C, HW), jnp.float32),
        grid=grid,
        in_specs=[
            pl.BlockSpec((B, c_blk, HW), lambda ci: (0, ci, 0)),
            pl.BlockSpec((1, c_blk, 1), lambda ci: (0, ci, 0)),
            pl.BlockSpec((1, c_blk, 1), lambda ci: (0, ci, 0)),
        ],
        out_specs=pl.BlockSpec((B, c_blk, HW), lambda ci: (0, ci, 0)),
        compiler_params=pltpu.CompilerParams(
            dimension_semantics=("parallel",)),
    )(x3, g3, b3)

    return out.reshape(B, C, H, W)


# --------------------------------- main ---------------------------------------

if __name__ == "__main__":
    key = jax.random.PRNGKey(0)
    kx, kg, kb = jax.random.split(key, 3)

    B, C, H, W = 2, 16, 16, 16
    x = jax.random.normal(kx, (B, C, H, W), jnp.float32)
    gamma = 1.0 + 0.1 * jax.random.normal(kg, (C,), jnp.float32)
    beta = 0.1 * jax.random.normal(kb, (C,), jnp.float32)

    out = batchnorm2d_wrap_forward(x, gamma, beta)
    out = jax.block_until_ready(out)

    # Pure-JAX reference: training-mode BatchNorm2d (batch stats, biased variance).
    mean = jnp.mean(x, axis=(0, 2, 3), keepdims=True)
    var = jnp.mean((x - mean) ** 2, axis=(0, 2, 3), keepdims=True)
    ref = ((x - mean) * lax.rsqrt(var + EPS_BN)
           * gamma[None, :, None, None] + beta[None, :, None, None])

    assert out.shape == (B, C, H, W), out.shape
    assert out.dtype == jnp.float32
    assert bool(jnp.all(jnp.isfinite(out)))
    max_err = float(jnp.max(jnp.abs(out - ref)))
    assert max_err < 1e-4, max_err
    print("KERNEL_OK")
</pallas_src>

<mosaic_0001>
module attributes {stable_mosaic.version = 11 : i64} {
  func.func @_bn_train_kernel(%arg0: i32, %arg1: memref<2x8x256xf32, #tpu.memory_space<vmem>>, %arg2: memref<1x8x1xf32, #tpu.memory_space<vmem>>, %arg3: memref<1x8x1xf32, #tpu.memory_space<vmem>>, %arg4: memref<2x8x256xf32, #tpu.memory_space<vmem>>) attributes {dimension_semantics = [#tpu.dimension_semantics<parallel>], iteration_bounds = array<i64: 2>, scalar_prefetch = 0 : i64, scratch_operands = 0 : i64, tpu.core_type = #tpu.core_type<tc>, window_params = [{transform_indices = @transform_0, window_bounds = array<i64: 2, 8, 256>}, {transform_indices = @transform_1, window_bounds = array<i64: 1, 8, 1>}, {transform_indices = @transform_2, window_bounds = array<i64: 1, 8, 1>}, {transform_indices = @transform_3, window_bounds = array<i64: 2, 8, 256>}]} {
    %c0 = arith.constant 0 : index
    %c0_0 = arith.constant 0 : index
    %c0_1 = arith.constant 0 : index
    %0 = vector.load %arg1[%c0, %c0_0, %c0_1] : memref<2x8x256xf32, #tpu.memory_space<vmem>>, vector<2x8x256xf32>
    %cst = arith.constant dense<0.000000e+00> : vector<2x8xf32>
    %1 = vector.multi_reduction <add>, %0, %cst [2] : vector<2x8x256xf32> to vector<2x8xf32>
    %2 = vector.shape_cast %1 : vector<2x8xf32> to vector<2x8x1xf32>
    %3 = arith.mulf %0, %0 : vector<2x8x256xf32>
    %cst_2 = arith.constant dense<0.000000e+00> : vector<2x8xf32>
    %4 = vector.multi_reduction <add>, %3, %cst_2 [2] : vector<2x8x256xf32> to vector<2x8xf32>
    %5 = vector.shape_cast %4 : vector<2x8xf32> to vector<2x8x1xf32>
    %cst_3 = arith.constant dense<0.000000e+00> : vector<8x1xf32>
    %6 = vector.multi_reduction <add>, %2, %cst_3 [0] : vector<2x8x1xf32> to vector<8x1xf32>
    %7 = vector.shape_cast %6 : vector<8x1xf32> to vector<1x8x1xf32>
    %cst_4 = arith.constant dense<0.000000e+00> : vector<8x1xf32>
    %8 = vector.multi_reduction <add>, %5, %cst_4 [0] : vector<2x8x1xf32> to vector<8x1xf32>
    %9 = vector.shape_cast %8 : vector<8x1xf32> to vector<1x8x1xf32>
    %cst_5 = arith.constant 0.001953125 : f32
    %10 = vector.broadcast %cst_5 : f32 to vector<1x8x1xf32>
    %11 = arith.mulf %7, %10 : vector<1x8x1xf32>
    %cst_6 = arith.constant 0.001953125 : f32
    %12 = vector.broadcast %cst_6 : f32 to vector<1x8x1xf32>
    %13 = arith.mulf %9, %12 : vector<1x8x1xf32>
    %14 = arith.mulf %11, %11 : vector<1x8x1xf32>
    %15 = arith.subf %13, %14 : vector<1x8x1xf32>
    %cst_7 = arith.constant 9.99999974E-6 : f32
    %16 = vector.broadcast %cst_7 : f32 to vector<1x8x1xf32>
    %17 = arith.addf %15, %16 : vector<1x8x1xf32>
    %18 = math.rsqrt %17 : vector<1x8x1xf32>
    %c0_8 = arith.constant 0 : index
    %c0_9 = arith.constant 0 : index
    %c0_10 = arith.constant 0 : index
    %19 = vector.load %arg2[%c0_8, %c0_9, %c0_10] : memref<1x8x1xf32, #tpu.memory_space<vmem>>, vector<1x8x1xf32>
    %20 = arith.mulf %19, %18 : vector<1x8x1xf32>
    %c0_11 = arith.constant 0 : index
    %c0_12 = arith.constant 0 : index
    %c0_13 = arith.constant 0 : index
    %21 = vector.load %arg3[%c0_11, %c0_12, %c0_13] : memref<1x8x1xf32, #tpu.memory_space<vmem>>, vector<1x8x1xf32>
    %22 = arith.mulf %11, %20 : vector<1x8x1xf32>
    %23 = arith.subf %21, %22 : vector<1x8x1xf32>
    %24 = vector.broadcast %20 : vector<1x8x1xf32> to vector<2x8x256xf32>
    %25 = arith.mulf %0, %24 : vector<2x8x256xf32>
    %26 = vector.broadcast %23 : vector<1x8x1xf32> to vector<2x8x256xf32>
    %27 = arith.addf %25, %26 : vector<2x8x256xf32>
    %c0_14 = arith.constant 0 : index
    %c0_15 = arith.constant 0 : index
    %c0_16 = arith.constant 0 : index
    %28 = vector.load %arg4[%c0_14, %c0_15, %c0_16] : memref<2x8x256xf32, #tpu.memory_space<vmem>>, vector<2x8x256xf32>
    tpu.vector_store %arg4[%c0_14, %c0_15, %c0_16], %27 {strides = array<i32>} : memref<2x8x256xf32, #tpu.memory_space<vmem>>, vector<2x8x256xf32>,
    return
  }
  func.func @transform_0(%arg0: i32) -> (i32, i32, i32) {
    %c0_i32 = arith.constant 0 : i32
    %c0_i32_0 = arith.constant 0 : i32
    %c0_i32_1 = arith.constant 0 : i32
    return %c0_i32, %arg0, %c0_i32_0 : i32, i32, i32
  }
  func.func @transform_1(%arg0: i32) -> (i32, i32, i32) {
    %c0_i32 = arith.constant 0 : i32
    %c0_i32_0 = arith.constant 0 : i32
    %c0_i32_1 = arith.constant 0 : i32
    return %c0_i32, %arg0, %c0_i32_0 : i32, i32, i32
  }
  func.func @transform_2(%arg0: i32) -> (i32, i32, i32) {
    %c0_i32 = arith.constant 0 : i32
    %c0_i32_0 = arith.constant 0 : i32
    %c0_i32_1 = arith.constant 0 : i32
    return %c0_i32, %arg0, %c0_i32_0 : i32, i32, i32
  }
  func.func @transform_3(%arg0: i32) -> (i32, i32, i32) {
    %c0_i32 = arith.constant 0 : i32
    %c0_i32_0 = arith.constant 0 : i32
    %c0_i32_1 = arith.constant 0 : i32
    return %c0_i32, %arg0, %c0_i32_0 : i32, i32, i32
  }
}

</mosaic_0001>

<bundles_post_ra>
// kernel: tpu_custom_call.1
= control target key start
LH: loop header
LB: loop body
LE: loop exit
PB: predicated region body
PF: predicated region fallthrough
CT: control target
= control target key end

     0   :  { %8 = vsyncpa [#allocation3], 0  ;;  %s767_s0 = inlined_call_operand.hbm [shape: f32[2,16,256], index: 0, kind: input, shape index: {}]   ;;  %s768_s1 = inlined_call_operand.vmem [shape: f32[1,16,1], index: 1, kind: input, shape index: {}]   ;;  %s769_s2 = inlined_call_operand.vmem [shape: f32[1,16,1], index: 2, kind: input, shape index: {}]   ;;  %s770_s3 = inlined_call_operand.hbm [shape: f32[2,16,256], index: 3, kind: output, shape index: {}]  }
   0x1   :  { %10 = vsyncpa [#allocation3 + $0x1], 0 }
   0x2   :  { %11 = vsyncpa [#allocation4], 0 }
   0x3   :  { %13 = vsyncpa [#allocation4 + $0x1], 0  ;;  %s591_s12 = smov 0   ;;  %s593_s13 = smov 0  }
   0x4   :  { %s595_s14 = smov 0   ;;  %s597_s15 = smov 0  }
   0x5 LB: > { %s612_s16 = sadd.s32 4294967295, %s560_s15   ;;  %s389_s17 = sadd.s32 4294967294, %s560_s15   ;;  %s560_s15 = sphi %s597_s15, %s784_s15   ;;  %s556_s14 = sphi %s595_s14, %s783_s14   ;;  %s552_s13 = sphi %s593_s13, %s782_s13   ;;  %s548_s12 = sphi %s591_s12, %s781_s12  }
   0x6   : > { %s616_s18 = sadd.s32 1, %s560_s15   ;;  %s26_s19 = sadd.s32 1, %s556_s14 }
   0x7   : > { %s23_s20 = ssub.s32 %s560_s15, %s616_s18  ;;  %p33_p0 = scmp.ne.s32.totalorder %s556_s14, %s552_s13 }
   0x8   : > { %p24_p1 = scmp.eq.s32.totalorder %s23_s20, 0  ;;  %p34_p2 = scmp.eq.s32.totalorder %s560_s15, 0 }
   0x9   : > { %p39_p3 = scmp.ne.s32.totalorder %s552_s13, %s548_s12  ;;  %p40_p4 = scmp.eq.s32.totalorder %s612_s16, 0 }
   0xa   : > { %s628_s21 = scalar_select %p24_p1, %s556_s14, %s26_s19  }
   0xb   : > { %p630_p5 = por %p34_p2, %p33_p0  ;;  %p634_p6 = por %p40_p4, %p39_p3 }
   0xc   : > { %p115_p7 = scmp.eq.s32.totalorder %s612_s16, 1  ;;  %p121_p8 = scmp.eq.s32.totalorder %s389_s17, 1 }
   0xd   : > { %p419_p10 = scmp.lt.s32.totalorder %s560_s15, 2  ;;  %s141_s26 = sand.u32 1, %s556_s14  }
   0xe   : > { %p641_p11 = por %p115_p7, %p33_p0  ;;  %p645_p12 = por %p121_p8, %p39_p3 }
   0xf   : > { %s405_s27 = sshll.u32 %s560_s15, 8  ;;  %s392_s28 = sshll.u32 %s141_s26, 5 }
  0x10   : > { %s774_s24 = scalar_select %p641_p11, 1, 0 }
  0x11   : > { %s775_s25 = scalar_select %p645_p12, 1, 0 }
  0x12   : > { %s654_s4 = scalar_lea.hbm %s767_s0, %s405_s27  ;;  %s145_s5 = scalar_lea.vmem [#allocation2], %s392_s28 }
  0x13   : > { %s152_s6 = sshll.u32 %s145_s5, 4  ;;  %p658_p13 = pnand %p419_p10, %p630_p5  ;;  %s662_s6 = int_to_ptr.vmem [resolvable:$true] %s152_s6 }
  0x14   : > { %s665_s8 = scalar_lea.sflag [#allocation3], %s141_s26  ;;  %s464_s9 = scalar_lea.hbm %s654_s4, 512 }
  0x15   : > { %p465_p1 = scmp.ne.s32.totalorder %s654_s4, %s464_s9  ;;  %p466_p2 = pneg %p658_p13 }
  0x16   : > { %s469_s17 = scalar_lea.hbm %s767_s0, 1024  ;;  %p470_p5 = scmp.lt.u32.totalorder %s654_s4, %s767_s0 }
  0x17   : > { %p467_p3 = pnand %p466_p2, %p465_p1  ;;  %p471_p7 = scmp.lt.u32.totalorder %s469_s17, %s464_s9 }
  0x18   : > { %p473_p10 = scmp.lt.u32.totalorder %s464_s9, %s654_s4 }
  0x19   : > { %p468_p4 = pneg %p467_p3  ;;  %p472_p8 = por %p471_p7, %p470_p5 }
  0x1b   : > { %p474_p9 = por %p473_p10, %p472_p8 }
  0x1d   : > { %p475_p0 = pnand %p474_p9, %p468_p4 }
  0x1f   : > { %478 = shalt.err (!%p475_p0)
}
  0x20   : > { %s479_s22 = scalar_lea.vmem %s662_s6, 512  ;;  %s562_s26 = smov [#allocation2]  }
  0x21   : > { %p480_p1 = scmp.ne.s32.totalorder %s662_s6, %s479_s22  ;;  %s484_s27 = sshll.u32 %s562_s26, 4  ;;  %s485_s27 = int_to_ptr.vmem [resolvable:$false] %s484_s27 }
  0x22   : > { %s486_s28 = scalar_lea.vmem %s485_s27, 1024  ;;  %p487_p11 = scmp.lt.s32.totalorder %s662_s6, %s485_s27 }
  0x23   : > { %p482_p3 = pnand %p480_p1, %p466_p2  ;;  %p488_p5 = scmp.lt.s32.totalorder %s486_s28, %s479_s22 }
  0x25   : > { %p483_p12 = pneg %p482_p3  ;;  %p489_p7 = por %p488_p5, %p487_p11 }
  0x27   : > { %p490_p8 = pnand %p489_p7, %p483_p12 }
  0x29   : > { %493 = shalt.err (!%p490_p8)
}
  0x2a   : > { %s563_s29 = smov 512   ;;  %s564_s30 = smov 256  }
  0x2b   : > { %s565_s5 = smov 16   ;;  %p174_p9 = scmp.lt.s32.totalorder %s560_s15, 3 }
  0x2c   : > { %414 = dma.hbm_to_vmem [thread:$0]  (!%p658_p13), %s654_s4, 512, %s662_s6, %s665_s8, %s563_s29, %s564_s30, %s565_s5  }
  0x2d   : > { %p777_p0 = scmp.ge.s32.totalorder %s560_s15, 1 }
  0x2f   : > { %p175_p2 = pnand %p777_p0, %p174_p9 }
  0x30   : > { %s697_s9 = sand.u32 (!%p175_p2), 1, %s552_s13  }
  0x31   : > { %178 = sbr.rel (%p175_p2) target bundleno = 380 (0x17c), region = 32  ;;  %s396_s10 = sshll.u32 (!%p175_p2), %s697_s9, 5 }
  0x32   : > { %s181_s11 = scalar_lea.sflag (!%p175_p2), [#allocation3], %s697_s9  ;;  %s184_s17 = scalar_lea.vmem (!%p175_p2), [#allocation2], %s396_s10 }
  0x38   : > { %539 = dma.done.wait (%p634_p6), %s181_s11, 512  }
  0x39   : > { %541 = vsyncadd (%p634_p6), %s181_s11, 4294966784  ;;  %v223_v0 = vld [vmem:[%s184_s17] sm:$0xff]  ;;  %v224_v1 = vld [vmem:[%s184_s17 + $0x8] sm:$0xff]  ;;  %v566_v12 = vmov 0   ;;  %p215_p6 = scmp.lt.s32.totalorder %s612_s16, 1  ;;  %s214_s26 = scalar_lea.vmem [#allocation5], %s396_s10 }
  0x3a   : > { %v225_v2 = vld [vmem:[%s184_s17 + $0x10] sm:$0xff]  ;;  %v227_v3 = vadd.f32 %v224_v1, %v223_v0  ;;  %v233_v4 = vmul.f32 %v223_v0, %v223_v0  ;;  %v234_v5 = vmul.f32 %v224_v1, %v224_v1  ;;  %v226_v6 = vld [vmem:[%s184_s17 + $0x18] sm:$0xff]  ;;  %460 = vset.pattern.permute.xlu0 %v566_v12  ;;  %461 = vset.pattern.permute.xlu1 %v566_v12  ;;  %s292_s27 = sshll.u32 %s214_s26, 4  ;;  %s406_s28 = sshll.u32 %s612_s16, 8  ;;  %s718_s27 = int_to_ptr.vmem [resolvable:$true] %s292_s27 }
  0x3b   : > { %v235_v7 = vmul.f32 %v225_v2, %v225_v2  ;;  %v236_v8 = vmul.f32 %v226_v6, %v226_v6  ;;  %v230_v10 = vadd.f32 %v226_v6, %v225_v2  ;;  %s216_s23 = scalar_select %p215_p6, %s612_s16, 1 }
  0x3c   : > { %228 = vadd.xlane.f32.xlu0 %v227_v3  ;;  %v237_v9 = vadd.f32 %v234_v5, %v233_v4  ;;  %s723_s5 = scalar_lea.hbm %s770_s3, %s406_s28  ;;  %s279_s16 = scalar_lea.sflag [#allocation4], %s697_s9 }
  0x3d   : > { %v240_v11 = vadd.f32 %v236_v8, %v235_v7  ;;  %s398_s4 = sshll.u32 %s216_s23, 3  ;;  %s494_s10 = scalar_lea.vmem %s718_s27, 512 }
  0x3e   : > { %238 = vadd.xlane.f32.xlu1 %v237_v9  ;;  %s218_s8 = scalar_lea.vmem %s768_s1, %s398_s4  ;;  %s222_s22 = scalar_lea.vmem %s769_s2, %s398_s4 }
  0x3f   : > { %v251_v24 = vld [vmem:[%s218_s8] sm:$0xff]  ;;  %p495_p11 = scmp.ne.s32.totalorder %s718_s27, %s494_s10  ;;  %p778_p12 = scmp.ne.s32.totalorder %s774_s24, 0 }
  0x40   : > { %231 = vadd.xlane.f32.xlu0 %v230_v10  ;;  %v253_v27 = vld [vmem:[%s222_s22] sm:$0xff]  ;;  %s567_s11 = smov [#allocation5]  }
  0x41   : > { %p496_p13 = pnand %p495_p11, %p778_p12  ;;  %s498_s17 = sshll.u32 %s567_s11, 4  ;;  %s499_s17 = int_to_ptr.vmem [resolvable:$false] %s498_s17 }
  0x42   : > { %241 = vadd.xlane.f32.xlu1 %v240_v11  ;;  %s500_s23 = scalar_lea.vmem %s499_s17, 1024  ;;  %p501_p10 = scmp.lt.s32.totalorder %s718_s27, %s499_s17 }
  0x43   : > { %p497_p4 = pneg %p496_p13  ;;  %p502_p1 = scmp.lt.s32.totalorder %s500_s23, %s494_s10 }
  0x45   : > { %p503_p3 = por %p502_p1, %p501_p10 }
  0x47   : > { %p504_p5 = pnand %p503_p3, %p497_p4 }
  0xc9   : > { %v229_v13 = vpop.xlane.xlu0 %228 }
  0xcb   : > { %v239_v14 = vpop.xlane.xlu1 %238 }
  0xcd   : > { %v232_v15 = vpop.xlane.xlu0 %231 }
  0xce   : > { %v243_v16 = vadd.f32 %v232_v15, %v229_v13 }
  0xcf   : > { %v242_v17 = vpop.xlane.xlu1 %241 }
  0xd0   : > { %v245_v18 = vmul.f32 0.001953125, %v243_v16  ;;  %v244_v19 = vadd.f32 %v242_v17, %v239_v14 }
  0xd2   : > { %v247_v20 = vmul.f32 %v245_v18, %v245_v18  ;;  %v246_v21 = vmul.f32 0.001953125, %v244_v19 }
  0xd4   : > { %v248_v22 = vsub.f32 %v246_v21, %v247_v20 }
  0xd6   : > { %v249_v23 = vadd.f32 1e-05, %v248_v22 }
  0xd8   : > { %462 = vrsqrt.f32 %v249_v23 }
  0xe2   : > { %v463_v25 = vpop.eup %462 }
  0xe3   : > { %v252_v26 = vmul.f32 %v463_v25, %v251_v24 }
  0xe5   : > { %258 = vperm.xlu0 %460, %v252_v26   ;;  %v254_v28 = vmul.f32 %v252_v26, %v245_v18 }
  0xe7   : > { %v255_v29 = vsub.f32 %v253_v27, %v254_v28 }
  0xe9   : > { %267 = vperm.xlu1 %461, %v255_v29  }
 0x164   : > { %v259_v30 = vpop.permute.xlu0 %258 }
 0x165   : > { %v261_v31 = vmul.f32 %v259_v30, %v223_v0  ;;  %v262_v32 = vmul.f32 %v259_v30, %v224_v1  ;;  %v263_v33 = vmul.f32 %v259_v30, %v225_v2  ;;  %v264_v34 = vmul.f32 %v259_v30, %v226_v6 }
 0x168   : > { %v268_v35 = vpop.permute.xlu1 %267 }
 0x169   : > { %v270_v36 = vadd.f32 %v268_v35, %v261_v31  ;;  %v271_v37 = vadd.f32 %v268_v35, %v262_v32  ;;  %v272_v38 = vadd.f32 %v268_v35, %v263_v33  ;;  %v273_v39 = vadd.f32 %v268_v35, %v264_v34 }
 0x16b   : > { %274 = vst [vmem:[%s214_s26] sm:$0xff] %v270_v36  ;;  %275 = vst [vmem:[%s214_s26 + $0x8] sm:$0xff] %v271_v37 }
 0x16c   : > { %276 = vst [vmem:[%s214_s26 + $0x10] sm:$0xff] %v272_v38  ;;  %277 = vst [vmem:[%s214_s26 + $0x18] sm:$0xff] %v273_v39 }
 0x16d   : > { %507 = shalt.err (!%p504_p5)
}
 0x16e   : > { %s508_s4 = scalar_lea.hbm %s723_s5, 512  ;;  %s512_s8 = scalar_lea.hbm %s770_s3, 1024 }
 0x16f   : > { %p509_p7 = scmp.ne.s32.totalorder %s723_s5, %s508_s4  ;;  %p513_p0 = scmp.lt.u32.totalorder %s723_s5, %s770_s3 }
 0x170   : > { %p514_p2 = scmp.lt.u32.totalorder %s512_s8, %s508_s4  ;;  %p516_p11 = scmp.lt.u32.totalorder %s508_s4, %s723_s5 }
 0x171   : > { %p510_p8 = pnand %p509_p7, %p778_p12 }
 0x172   : > { %p515_p6 = por %p514_p2, %p513_p0 }
 0x173   : > { %p511_p9 = pneg %p510_p8 }
 0x174   : > { %p517_p13 = por %p516_p11, %p515_p6 }
 0x176   : > { %p518_p4 = pnand %p517_p13, %p511_p9 }
 0x178   : > { %521 = shalt.err (!%p518_p4)
}
 0x179   : > { %s568_s22 = smov 256   ;;  %s569_s26 = smov 512  }
 0x17a   : > { %s570_s28 = smov 16  }
 0x17b   : > { %409 = dma.vmem_to_hbm [thread:$0]  (%p778_p12), %s718_s27, 512, %s723_s5, %s279_s16, %s568_s22, %s569_s26, %s570_s28  }
 0x17c PF: > { %s307_s29 = sand.u32 1, %s548_s12   ;;  %p779_p10 = scmp.ne.s32.totalorder %s775_s25, 0 }
 0x17d   : > { %p780_p1 = scmp.ge.s32.totalorder %s560_s15, 2  ;;  %s308_s30 = scalar_lea.sflag [#allocation4], %s307_s29 }
 0x17f   : > { %p416_p3 = pnand %p780_p1, %p779_p10 }
 0x181   : > { %543 = dma.done.wait (!%p416_p3), %s308_s30, 512  }
 0x182   : > { %545 = vsyncadd (!%p416_p3), %s308_s30, 4294966784  ;;  %p16_p5 = scmp.ge.s32.totalorder %s616_s18, 4   ;;  %s781_s12 = smov %s552_s13 }
 0x183   : > { %s782_s13 = smov %s556_s14  ;;  %s783_s14 = smov %s628_s21 }
 0x184   : > { %s784_s15 = smov %s616_s18  ;;  %18 = sbr.rel (!%p16_p5) target bundleno = 5 (0x5), region = 83 }
 0x18b   :  { %313 = vsyncpa [#allocation3], 1 }
 0x18c   :  { %315 = vsyncpa [#allocation3 + $0x1], 1 }
 0x18d   :  { %316 = vsyncpa [#allocation4], 1 }
 0x18e   :  { %318 = vsyncpa [#allocation4 + $0x1], 1 }

</bundles_post_ra>
